<compile_context>
chip_gen: v7x
topology: tpu7x:2x2x1
jax: 0.10.0
libtpu: 0.0.40
codegen_flags: <defaults>
</compile_context>

<pallas_src>
import math

import jax
import jax.numpy as jnp
import numpy as np
from jax.experimental import pallas as pl
from jax.experimental.pallas import tpu as pltpu


# ----------------------------------------------------------------------------
# Mask construction (pure Python/numpy glue — identical to MyMADE.__init__)
# ----------------------------------------------------------------------------
def build_made_masks(Xlength=6, linearScaleN=5):
    innnerDepth = Xlength  # the module overwrites innnerDepth with Xlength
    MK = [list(range(Xlength)), list(range(innnerDepth)), list(range(Xlength))]

    mask_list = []
    iolengthList = [[Xlength, innnerDepth], [innnerDepth, Xlength]]
    idx = 0
    for L in iolengthList:
        idx += 1
        i0, j0 = L
        mask = np.zeros((i0, j0), dtype=np.float32)
        for i in range(i0):
            for j in range(j0):
                maskp0 = MK[idx - 1]
                maskp1 = MK[idx]
                if maskp0[i] < maskp1[j] and maskp0[i] >= maskp1[j] - linearScaleN:
                    mask[i][j] = 1.0
        mask_list.append(mask)
    # Each mask is [in_features, out_features]; F.linear applies mask.T * W.
    return mask_list


# ----------------------------------------------------------------------------
# Pallas kernel: fused  relu(x @ W1e + b1)  ->  sigmoid(h @ W2e + b2)
# (weights pre-masked, pre-transposed to [in, out]; hidden dim padded to 8)
# ----------------------------------------------------------------------------
def made_kernel(x_ref, w1_ref, b1_ref, w2_ref, b2_ref, o_ref):
    x = x_ref[...]                                                     # (TB, d_in)
    h = jnp.dot(x, w1_ref[...], preferred_element_type=jnp.float32)   # (TB, H)
    h = jnp.maximum(h + b1_ref[...], 0.0)                             # bias + ReLU
    y = jnp.dot(h, w2_ref[...], preferred_element_type=jnp.float32)   # (TB, d_out)
    o_ref[...] = jax.nn.sigmoid(y + b2_ref[...]).astype(o_ref.dtype)


# ----------------------------------------------------------------------------
# Wrapper: hoisted preprocessing + pipelined, batch-gridded pallas_call
# ----------------------------------------------------------------------------
def make_my_made_forward(w1, b1, mask1, w2, b2, mask2, *, block_rows=4096):
    """Precompute effective weights once; return a jitted forward(x).

    Args:
      w1    : (innerDepth, Xlength) fc1 weight (PyTorch [out, in] layout).
      b1    : (innerDepth,)         fc1 bias.
      mask1 : (Xlength, innerDepth) maskList[0] ([in, out] layout).
      w2    : (Xlength, innerDepth) fc3 weight (PyTorch [out, in] layout).
      b2    : (Xlength,)            fc3 bias.
      mask2 : (innerDepth, Xlength) maskList[1] ([in, out] layout).
    """
    d_hid, d_in = w1.shape
    d_out = w2.shape[0]
    H = 8 * pl.cdiv(d_hid, 8)      # hidden width padded to a sublane multiple (8)

    # Hoisted glue (runs once): mask * W.T, zero-pad hidden dim only.
    w1_eff = jnp.zeros((d_in, H), jnp.float32)
    w1_eff = w1_eff.at[:, :d_hid].set((mask1 * w1.T).astype(jnp.float32))
    w2_eff = jnp.zeros((H, d_out), jnp.float32)
    w2_eff = w2_eff.at[:d_hid, :].set((mask2 * w2.T).astype(jnp.float32))
    b1_p = jnp.zeros((1, H), jnp.float32)
    b1_p = b1_p.at[0, :d_hid].set(b1.astype(jnp.float32))
    b2_p = b2.astype(jnp.float32).reshape(1, d_out)
    w1_eff, w2_eff, b1_p, b2_p = jax.device_put((w1_eff, w2_eff, b1_p, b2_p))

    def forward(x):
        x = x.astype(jnp.float32)
        B = x.shape[0]
        # Batch tile: multiple of 8, capped at block_rows, and ~B/2 when B is
        # small so the grid has >= 2 steps (v7x megacore).  Partial last block
        # is handled by Pallas masked writeback (rows are independent).
        tb = min(block_rows, max(8, 8 * pl.cdiv(pl.cdiv(B, 2), 8)))
        grid = (pl.cdiv(B, tb),)

        return pl.pallas_call(
            made_kernel,
            out_shape=jax.ShapeDtypeStruct((B, d_out), jnp.float32),
            grid=grid,
            in_specs=[
                pl.BlockSpec((tb, d_in), lambda i: (i, 0)),    # x: batch-tiled
                pl.BlockSpec((d_in, H), lambda i: (0, 0)),     # W1e: grid-invariant
                pl.BlockSpec((1, H), lambda i: (0, 0)),        # b1 (padded)
                pl.BlockSpec((H, d_out), lambda i: (0, 0)),    # W2e: grid-invariant
                pl.BlockSpec((1, d_out), lambda i: (0, 0)),    # b2
            ],
            out_specs=pl.BlockSpec((tb, d_out), lambda i: (i, 0)),
            compiler_params=pltpu.CompilerParams(
                dimension_semantics=("parallel",)),
        )(x, w1_eff, b1_p, w2_eff, b2_p)

    return jax.jit(forward)


# ----------------------------------------------------------------------------
# Pure-JAX reference (for a sanity check against the kernel)
# ----------------------------------------------------------------------------
def my_made_reference(x, w1, b1, mask1, w2, b2, mask2):
    x = x.astype(jnp.float32)
    h = jax.nn.relu(x @ (mask1 * w1.T) + b1)
    return jax.nn.sigmoid(h @ (mask2 * w2.T) + b2)


if __name__ == "__main__":
    Xlength = 6
    innerDepth = Xlength          # module semantics: innnerDepth is overwritten
    linearScaleN = 5
    batch = 8

    mask1_np, mask2_np = build_made_masks(Xlength, linearScaleN)
    mask1 = jnp.asarray(mask1_np)            # (Xlength, innerDepth)
    mask2 = jnp.asarray(mask2_np)            # (innerDepth, Xlength)

    key = jax.random.PRNGKey(0)
    kx, kw1, kb1, kw2, kb2, kx2, kx3 = jax.random.split(key, 7)

    # Deterministic parameter init, mimicking nn.Linear's U(-1/sqrt(fan_in), ...)
    bound1 = 1.0 / math.sqrt(Xlength)
    bound2 = 1.0 / math.sqrt(innerDepth)
    w1 = jax.random.uniform(kw1, (innerDepth, Xlength), jnp.float32, -bound1, bound1)
    b1 = jax.random.uniform(kb1, (innerDepth,), jnp.float32, -bound1, bound1)
    w2 = jax.random.uniform(kw2, (Xlength, innerDepth), jnp.float32, -bound2, bound2)
    b2 = jax.random.uniform(kb2, (Xlength,), jnp.float32, -bound2, bound2)

    forward = make_my_made_forward(w1, b1, mask1, w2, b2, mask2)

    # Small-batch check (single grid point).
    x = jax.random.normal(kx, (batch, Xlength), jnp.float32)
    y_kernel = jax.block_until_ready(forward(x))
    y_ref = my_made_reference(x, w1, b1, mask1, w2, b2, mask2)
    np.testing.assert_allclose(np.asarray(y_kernel), np.asarray(y_ref),
                               rtol=1e-5, atol=1e-5)

    # Larger-batch check (exercises the pipelined 2-step batch grid).
    x_big = jax.random.normal(kx2, (1024, Xlength), jnp.float32)
    y_kernel_big = jax.block_until_ready(forward(x_big))
    y_ref_big = my_made_reference(x_big, w1, b1, mask1, w2, b2, mask2)
    np.testing.assert_allclose(np.asarray(y_kernel_big), np.asarray(y_ref_big),
                               rtol=1e-5, atol=1e-5)

    # Ragged-batch check (B not a multiple of the tile; partial last block).
    x_rag = jax.random.normal(kx3, (1000, Xlength), jnp.float32)
    y_kernel_rag = jax.block_until_ready(forward(x_rag))
    y_ref_rag = my_made_reference(x_rag, w1, b1, mask1, w2, b2, mask2)
    np.testing.assert_allclose(np.asarray(y_kernel_rag), np.asarray(y_ref_rag),
                               rtol=1e-5, atol=1e-5)

    print("KERNEL_OK")
</pallas_src>

<mosaic_0001>
module attributes {stable_mosaic.version = 11 : i64} {
  func.func @made_kernel(%arg0: i32, %arg1: memref<8x6xf32, #tpu.memory_space<vmem>>, %arg2: memref<6x8xf32, #tpu.memory_space<vmem>>, %arg3: memref<1x8xf32, #tpu.memory_space<vmem>>, %arg4: memref<8x6xf32, #tpu.memory_space<vmem>>, %arg5: memref<1x6xf32, #tpu.memory_space<vmem>>, %arg6: memref<8x6xf32, #tpu.memory_space<vmem>>) attributes {dimension_semantics = [#tpu.dimension_semantics<parallel>], iteration_bounds = array<i64: 1>, scalar_prefetch = 0 : i64, scratch_operands = 0 : i64, tpu.core_type = #tpu.core_type<tc>, window_params = [{transform_indices = @transform_0, window_bounds = array<i64: 8, 6>}, {pipeline_mode = #tpu.pipeline_mode<synchronous>, transform_indices = @transform_1, window_bounds = array<i64: 6, 8>}, {pipeline_mode = #tpu.pipeline_mode<synchronous>, transform_indices = @transform_2, window_bounds = array<i64: 1, 8>}, {pipeline_mode = #tpu.pipeline_mode<synchronous>, transform_indices = @transform_3, window_bounds = array<i64: 8, 6>}, {pipeline_mode = #tpu.pipeline_mode<synchronous>, transform_indices = @transform_4, window_bounds = array<i64: 1, 6>}, {transform_indices = @transform_5, window_bounds = array<i64: 8, 6>}]} {
    %c0 = arith.constant 0 : index
    %c0_0 = arith.constant 0 : index
    %0 = vector.load %arg1[%c0, %c0_0] : memref<8x6xf32, #tpu.memory_space<vmem>>, vector<8x6xf32>
    %c0_1 = arith.constant 0 : index
    %c0_2 = arith.constant 0 : index
    %1 = vector.load %arg2[%c0_1, %c0_2] : memref<6x8xf32, #tpu.memory_space<vmem>>, vector<6x8xf32>
    %cst = arith.constant dense<0.000000e+00> : vector<8x8xf32>
    %2 = tpu.matmul %0, %1, %cst {dimension_numbers = #tpu.dot_dimension_numbers<[1], [0], [0], [1], [0, 0, 1, 1], [], []>} : vector<8x6xf32>, vector<6x8xf32>, vector<8x8xf32> -> vector<8x8xf32>
    %c0_3 = arith.constant 0 : index
    %c0_4 = arith.constant 0 : index
    %3 = vector.load %arg3[%c0_3, %c0_4] : memref<1x8xf32, #tpu.memory_space<vmem>>, vector<1x8xf32>
    %4 = vector.broadcast %3 : vector<1x8xf32> to vector<8x8xf32>
    %5 = arith.addf %2, %4 : vector<8x8xf32>
    %cst_5 = arith.constant 0.000000e+00 : f32
    %6 = vector.broadcast %cst_5 : f32 to vector<8x8xf32>
    %7 = arith.maximumf %5, %6 : vector<8x8xf32>
    %c0_6 = arith.constant 0 : index
    %c0_7 = arith.constant 0 : index
    %8 = vector.load %arg4[%c0_6, %c0_7] : memref<8x6xf32, #tpu.memory_space<vmem>>, vector<8x6xf32>
    %cst_8 = arith.constant dense<0.000000e+00> : vector<8x6xf32>
    %9 = tpu.matmul %7, %8, %cst_8 {dimension_numbers = #tpu.dot_dimension_numbers<[1], [0], [0], [1], [0, 0, 1, 1], [], []>} : vector<8x8xf32>, vector<8x6xf32>, vector<8x6xf32> -> vector<8x6xf32>
    %c0_9 = arith.constant 0 : index
    %c0_10 = arith.constant 0 : index
    %10 = vector.load %arg5[%c0_9, %c0_10] : memref<1x6xf32, #tpu.memory_space<vmem>>, vector<1x6xf32>
    %11 = vector.broadcast %10 : vector<1x6xf32> to vector<8x6xf32>
    %12 = arith.addf %9, %11 : vector<8x6xf32>
    %13 = arith.negf %12 : vector<8x6xf32>
    %14 = math.exp %13 : vector<8x6xf32>
    %cst_11 = arith.constant 1.000000e+00 : f32
    %15 = vector.broadcast %cst_11 : f32 to vector<8x6xf32>
    %16 = arith.addf %15, %14 : vector<8x6xf32>
    %17 = arith.divf %15, %16 : vector<8x6xf32>
    %c0_12 = arith.constant 0 : index
    %c0_13 = arith.constant 0 : index
    %18 = vector.load %arg6[%c0_12, %c0_13] : memref<8x6xf32, #tpu.memory_space<vmem>>, vector<8x6xf32>
    tpu.vector_store %arg6[%c0_12, %c0_13], %17 {strides = array<i32>} : memref<8x6xf32, #tpu.memory_space<vmem>>, vector<8x6xf32>,
    return
  }
  func.func @transform_0(%arg0: i32) -> (i32, i32) {
    %c0_i32 = arith.constant 0 : i32
    %c0_i32_0 = arith.constant 0 : i32
    return %arg0, %c0_i32 : i32, i32
  }
  func.func @transform_1(%arg0: i32) -> (i32, i32) {
    %c0_i32 = arith.constant 0 : i32
    %c0_i32_0 = arith.constant 0 : i32
    %c0_i32_1 = arith.constant 0 : i32
    return %c0_i32, %c0_i32_0 : i32, i32
  }
  func.func @transform_2(%arg0: i32) -> (i32, i32) {
    %c0_i32 = arith.constant 0 : i32
    %c0_i32_0 = arith.constant 0 : i32
    %c0_i32_1 = arith.constant 0 : i32
    return %c0_i32, %c0_i32_0 : i32, i32
  }
  func.func @transform_3(%arg0: i32) -> (i32, i32) {
    %c0_i32 = arith.constant 0 : i32
    %c0_i32_0 = arith.constant 0 : i32
    %c0_i32_1 = arith.constant 0 : i32
    return %c0_i32, %c0_i32_0 : i32, i32
  }
  func.func @transform_4(%arg0: i32) -> (i32, i32) {
    %c0_i32 = arith.constant 0 : i32
    %c0_i32_0 = arith.constant 0 : i32
    %c0_i32_1 = arith.constant 0 : i32
    return %c0_i32, %c0_i32_0 : i32, i32
  }
  func.func @transform_5(%arg0: i32) -> (i32, i32) {
    %c0_i32 = arith.constant 0 : i32
    %c0_i32_0 = arith.constant 0 : i32
    return %arg0, %c0_i32 : i32, i32
  }
}

</mosaic_0001>

<bundles_post_ra>
// kernel: forward.1
= control target key start
LH: loop header
LB: loop body
LE: loop exit
PB: predicated region body
PF: predicated region fallthrough
CT: control target
= control target key end

     0   :  { %10 = vsyncpa [#allocation3], 0  ;;  %s421_s0 = inlined_call_operand.hbm [shape: f32[8,6], index: 0, kind: input, shape index: {}]   ;;  %s422_s1 = inlined_call_operand.hbm [shape: f32[6,8], index: 1, kind: input, shape index: {}]   ;;  %s423_s2 = inlined_call_operand.vmem [shape: f32[1,8], index: 2, kind: input, shape index: {}]   ;;  %s424_s3 = inlined_call_operand.vmem [shape: f32[8,6], index: 3, kind: input, shape index: {}]   ;;  %s425_s4 = inlined_call_operand.vmem [shape: f32[1,6], index: 4, kind: input, shape index: {}]   ;;  %s426_s5 = inlined_call_operand.hbm [shape: f32[8,6], index: 5, kind: output, shape index: {}]  }
   0x1   :  { %11 = vsyncpa [#allocation6], 0 }
   0x2   :  { %12 = vsyncpa [#allocation4], 0  ;;  %s339_s18 = smov [#allocation2]   ;;  %s340_s20 = smov [#allocation5]  }
   0x3   :  { %s19_s19 = sshll.u32 %s339_s18, 4  ;;  %s29_s21 = sshll.u32 %s340_s20, 4  ;;  %s20_s19 = int_to_ptr.vmem [resolvable:$true] %s19_s19  ;;  %s30_s21 = int_to_ptr.vmem [resolvable:$true] %s29_s21 }
   0x4   :  { %s267_s24 = scalar_lea.hbm %s421_s0, 128 }
   0x5   :  { %p268_p0 = scmp.ne.s32.totalorder %s421_s0, %s267_s24  ;;  %p271_p1 = scmp.lt.u32.totalorder %s267_s24, %s421_s0 }
   0x7   :  { %p273_p2 = pnand %p271_p1, %p268_p0 }
   0x9   :  { %276 = shalt.err (!%p273_p2)
}
   0xa   :  { %s277_s29 = scalar_lea.vmem %s20_s19, 128  ;;  %p282_p4 = scmp.lt.s32.totalorder %s20_s19, %s20_s19 }
   0xb   :  { %p278_p3 = scmp.ne.s32.totalorder %s20_s19, %s277_s29  ;;  %p283_p5 = scmp.lt.s32.totalorder %s277_s29, %s277_s29 }
   0xd   :  { %p284_p6 = por %p283_p5, %p282_p4 }
   0xf   :  { %p285_p7 = pnand %p284_p6, %p278_p3 }
  0x11   :  { %288 = shalt.err (!%p285_p7)
}
  0x12   :  { %22 = dma.hbm_to_vmem [thread:$0]  %s421_s0, 128, %s20_s19, [#allocation3]  }
  0x13   :  { %s289_s9 = scalar_lea.hbm %s422_s1, 128 }
  0x14   :  { %p290_p8 = scmp.ne.s32.totalorder %s422_s1, %s289_s9  ;;  %p293_p9 = scmp.lt.u32.totalorder %s289_s9, %s422_s1 }
  0x16   :  { %p295_p10 = pnand %p293_p9, %p290_p8 }
  0x18   :  { %298 = shalt.err (!%p295_p10)
}
  0x19   :  { %s299_s14 = scalar_lea.vmem %s30_s21, 128  ;;  %p304_p12 = scmp.lt.s32.totalorder %s30_s21, %s30_s21 }
  0x1a   :  { %p300_p11 = scmp.ne.s32.totalorder %s30_s21, %s299_s14  ;;  %p305_p13 = scmp.lt.s32.totalorder %s299_s14, %s299_s14 }
  0x1c   :  { %p306_p0 = por %p305_p13, %p304_p12 }
  0x1e   :  { %p307_p1 = pnand %p306_p0, %p300_p11 }
  0x20   :  { %310 = shalt.err (!%p307_p1)
}
  0x21   :  { %32 = dma.hbm_to_vmem [thread:$0]  %s422_s1, 128, %s30_s21, [#allocation6]  }
  0x22   :  { %333 = dma.done.wait [#allocation3], 128  }
  0x23   :  { %334 = vsyncadd [#allocation3], 4294967168 }
  0x24   :  { %335 = dma.done.wait [#allocation6], 128  }
  0x25   :  { %336 = vsyncadd [#allocation6], 4294967168  ;;  %v341_v0 = vmov 0.0   ;;  %vm342_vm0 = vmmov 0   ;;  %vm58_vm1 = vcmask 1045504   ;;  %vm54_vm2 = vcmask 48128  }
  0x26   :  { %248 = vmatprep.subr.mxu0 %v341_v0  ;;  %250 = vmatprep.mubr.msk.f32.mxu0 %vm342_vm0, %v341_v0  ;;  %v46_v1 = vld [vmem:[#allocation5] sm:$0x3f]  ;;  %v45_v2 = vld [vmem:[#allocation2] sm:$0xff]  ;;  %vm141_vm3 = vcmask 64512  }
  0x27   :  { %253 = vmatprep.subr.mxu1 %v341_v0  ;;  %255 = vmatprep.mubr.msk.f32.mxu1 %vm342_vm0, %v341_v0  ;;  %v133_v3 = vld [vmem:[%s424_s3] sm:$0xff]  ;;  %s343_s3 = smov [#allocation7]  }
  0x28   :  { %249 = vmatpush3.msk.msra.mxu0 %vm58_vm1, %v46_v1  ;;  %254 = vmatpush3.msra.mxu1 %v133_v3  ;;  %v238_v4 = vld [vmem:[%s423_s2] ss:$0 sm:$0xff]  ;;  %s228_s2 = sshll.u32 %s343_s3, 4  ;;  %s229_s2 = int_to_ptr.vmem [resolvable:$true] %s228_s2 }
  0x29   :  { %251 = vmatmul.mubr.msk.f32.vlgmr.msra.gmra.mrb[0].mxu0 %vm54_vm2, %v45_v2  ;;  %v241_v9 = vld [vmem:[%s425_s4] ss:$0 sm:$0xff]  ;;  %s311_s21 = scalar_lea.vmem %s229_s2, 128  ;;  %p316_p3 = scmp.lt.s32.totalorder %s229_s2, %s229_s2 }
  0x2a   :  { %p312_p2 = scmp.ne.s32.totalorder %s229_s2, %s311_s21  ;;  %p317_p4 = scmp.lt.s32.totalorder %s311_s21, %s311_s21 }
  0x2c   :  { %p318_p5 = por %p317_p4, %p316_p3 }
  0x2e   :  { %p319_p6 = pnand %p318_p5, %p312_p2 }
  0xfc   :  { %v128_v5 = vpop.f32.mrb[0].mxu0 }
  0xfd   :  { %v129_v6 = vadd.f32 %v238_v4, %v128_v5  ;;  %v252_v7 = vpop.f32.mrb[1].mxu0 }
  0xff   :  { %v132_v8 = vmax.f32 %v129_v6, 0.0 }
 0x101   :  { %256 = vmatmul.mubr.msk.f32.vlgmr.msra.gmra.mrb[0].mxu1 %vm141_vm3, %v132_v8 }
 0x1d4   :  { %v211_v10 = vpop.f32.mrb[0].mxu1 }
 0x1d5   :  { %v212_v11 = vadd.f32 %v241_v9, %v211_v10  ;;  %v257_v12 = vpop.f32.mrb[1].mxu1 }
 0x1d7   :  { %v243_v13 = vmul.f32 -1.442695, %v212_v11 }
 0x1d9   :  { %263 = vpow2.f32 %v243_v13 }
 0x1e3   :  { %v264_v14 = vpop.eup %263 }
 0x1e4   :  { %v218_v15 = vadd.f32 1.0, %v264_v14 }
 0x1e6   :  { %265 = vrcp.f32 %v218_v15 }
 0x1f0   :  { %v266_v16 = vpop.eup %265 }
 0x1f1   :  { %221 = vst.msk [vmem:[#allocation7] sm:$0xff] %vm54_vm2, %v266_v16 }
 0x1f2   :  { %322 = shalt.err (!%p319_p6)
}
 0x1f3   :  { %s323_s23 = scalar_lea.hbm %s426_s5, 128 }
 0x1f4   :  { %p324_p7 = scmp.ne.s32.totalorder %s426_s5, %s323_s23  ;;  %p327_p8 = scmp.lt.u32.totalorder %s323_s23, %s426_s5 }
 0x1f6   :  { %p329_p9 = pnand %p327_p8, %p324_p7 }
 0x1f8   :  { %332 = shalt.err (!%p329_p9)
}
 0x1f9   :  { %231 = dma.vmem_to_hbm [thread:$0]  %s229_s2, 128, %s426_s5, [#allocation4]  }
 0x1fa   :  { %337 = dma.done.wait [#allocation4], 128  }
 0x1fb   :  { %338 = vsyncadd [#allocation4], 4294967168 }
 0x1fc   :  { %235 = vsyncpa [#allocation3], 1 }
 0x1fd   :  { %236 = vsyncpa [#allocation6], 1 }
 0x1fe   :  { %237 = vsyncpa [#allocation4], 1 }

</bundles_post_ra>
